<compile_context>
chip_gen: v6e
topology: v6e:2x2x1
jax: 0.10.0
libtpu: 0.0.40
codegen_flags: <defaults>
</compile_context>

<pallas_src>
import jax
import jax.numpy as jnp
from jax.experimental import pallas as pl
from jax.experimental.pallas import tpu as pltpu


def _linear_kernel(x_ref, wt_ref, b_ref, o_ref):
    x = x_ref[...]      # [tm, K]
    wt = wt_ref[...]    # [K, N]  (pre-transposed at init -> plain MXU matmul)
    b = b_ref[...]      # [1, N]  f32
    y = jnp.dot(x, wt, preferred_element_type=jnp.float32)   # f32 accumulate on MXU
    o_ref[...] = (y + b).astype(o_ref.dtype)                 # f32 epilogue, then cast


def _pick_row_tile(rows):
    # Largest row tile that divides `rows`, capped at 512 (VMEM-safe on v7x too).
    for tm in (512, 256, 128, 64, 32, 16, 8):
        if rows % tm == 0:
            return tm
    return rows  # fallback: single block (rows not a multiple of 8)


@jax.jit
def _pallas_linear(x2d, weight_t, bias2d):
    """x2d: [rows, K], weight_t: [K, N] (pre-transposed), bias2d: [1, N] f32."""
    rows, k = x2d.shape
    n = weight_t.shape[1]
    tm = _pick_row_tile(rows)
    grid = (rows // tm,)

    cost = pl.CostEstimate(
        flops=2 * rows * k * n,
        transcendentals=0,
        bytes_accessed=(rows * k * x2d.dtype.itemsize            # x read
                        + k * n * weight_t.dtype.itemsize        # weight read (once)
                        + n * 4                                  # bias read
                        + rows * n * x2d.dtype.itemsize),        # output write
    )

    return pl.pallas_call(
        _linear_kernel,
        out_shape=jax.ShapeDtypeStruct((rows, n), x2d.dtype),
        grid=grid,
        in_specs=[
            pl.BlockSpec((tm, k), lambda i: (i, 0)),   # row tile of activations
            pl.BlockSpec((k, n), lambda i: (0, 0)),    # weight: resident across row tiles
            pl.BlockSpec((1, n), lambda i: (0, 0)),    # bias: resident
        ],
        out_specs=pl.BlockSpec((tm, n), lambda i: (i, 0)),
        compiler_params=pltpu.CompilerParams(
            dimension_semantics=("parallel",),          # shards rows across v7x's 2 TCs
        ),
        cost_estimate=cost,
    )(x2d, weight_t, bias2d)


class TinyLinearModule:
    """JAX stand-in for the wrapped nn.Module: a single Linear(hidden, hidden)."""

    def __init__(self, hidden, dtype=jnp.float32):
        # Deterministic init; matches nn.Linear param shapes (weight [out, in], bias [out]).
        kw, kb = jax.random.split(jax.random.PRNGKey(42))
        bound = 1.0 / (hidden ** 0.5)
        self.weight = jax.random.uniform(kw, (hidden, hidden), dtype, -bound, bound)
        self.bias = jax.random.uniform(kb, (hidden,), dtype, -bound, bound)
        # Hoisted glue, computed once at init (not per call):
        #  - weight pre-transposed to [in, out] so the kernel is a plain [M,K]x[K,N] push.
        #  - bias as a 2-D f32 row for the f32 accumulator epilogue.
        self.weight_t = jnp.asarray(self.weight.T)
        self.bias2d = self.bias.reshape(1, hidden).astype(jnp.float32)

    def __call__(self, x):
        # Accept [..., hidden]; flatten leading dims into rows so a whole batch
        # amortizes one pallas_call launch and the resident weight DMA.
        lead = x.shape[:-1]
        x2d = x.reshape(-1, x.shape[-1])
        y2d = _pallas_linear(x2d, self.weight_t, self.bias2d)
        return y2d.reshape(*lead, y2d.shape[-1])


class DynamoExplain(Exception):
    def __init__(self, explain):
        super().__init__("DynamoExplain")
        self.explain = explain


class ExplainOutput:
    # TODO(synk): torch._dynamo.explain's graph-break / guard introspection is
    # compiler tooling with no Pallas equivalent; we record trivial stats plus
    # the traced forward's output (computed by the Pallas kernel) instead.
    def __init__(self, graph_count, graph_break_count, outputs):
        self.graph_count = graph_count
        self.graph_break_count = graph_break_count
        self.outputs = outputs


class ExplainWrapper:
    def __init__(self, module):
        self.module = module

    def forward(self, *args, **kwargs):
        # torch._dynamo.explain(self.module)(*args, **kwargs) executes the wrapped
        # module's forward under tracing; here that forward runs as a Pallas kernel.
        out = self.module(*args, **kwargs)
        explain = ExplainOutput(graph_count=1, graph_break_count=0, outputs=out)
        raise DynamoExplain(explain)

    __call__ = forward

    def __getattr__(self, name):
        if name == "module":
            return object.__getattribute__(self, name)
        return getattr(object.__getattribute__(self, "module"), name)

    def __setattr__(self, name, value):
        if name == "module":
            return object.__setattr__(self, name, value)
        return setattr(self.module, name, value)


if __name__ == "__main__":
    hidden = 128          # lane-dense: output last dim fills all 128 lanes
    batch, seq = 2, 8     # rows = 16 -> two 8-row tiles, grid=(2,) "parallel"

    key = jax.random.PRNGKey(0)
    x = jax.random.normal(key, (batch, seq, hidden), jnp.float32)

    inner = TinyLinearModule(hidden)
    wrapper = ExplainWrapper(inner)

    try:
        wrapper(x)
        raise AssertionError("ExplainWrapper.forward must raise DynamoExplain")
    except DynamoExplain as e:
        out = jax.block_until_ready(e.explain.outputs)
        ref = x @ inner.weight.T + inner.bias
        assert out.shape == (batch, seq, hidden)
        assert e.explain.graph_break_count == 0
        assert jnp.allclose(out, ref, atol=1e-5, rtol=1e-5)
        print("KERNEL_OK")
</pallas_src>

<mosaic_0001>
module attributes {stable_mosaic.version = 11 : i64} {
  func.func @_linear_kernel(%arg0: i32, %arg1: memref<16x128xf32, #tpu.memory_space<vmem>>, %arg2: memref<128x128xf32, #tpu.memory_space<vmem>>, %arg3: memref<1x128xf32, #tpu.memory_space<vmem>>, %arg4: memref<16x128xf32, #tpu.memory_space<vmem>>) attributes {dimension_semantics = [#tpu.dimension_semantics<parallel>], iteration_bounds = array<i64: 1>, scalar_prefetch = 0 : i64, scratch_operands = 0 : i64, tpu.core_type = #tpu.core_type<tc>, window_params = [{transform_indices = @transform_0, window_bounds = array<i64: 16, 128>}, {pipeline_mode = #tpu.pipeline_mode<synchronous>, transform_indices = @transform_1, window_bounds = array<i64: 128, 128>}, {pipeline_mode = #tpu.pipeline_mode<synchronous>, transform_indices = @transform_2, window_bounds = array<i64: 1, 128>}, {transform_indices = @transform_3, window_bounds = array<i64: 16, 128>}]} {
    %c0 = arith.constant 0 : index
    %c0_0 = arith.constant 0 : index
    %0 = vector.load %arg1[%c0, %c0_0] : memref<16x128xf32, #tpu.memory_space<vmem>>, vector<16x128xf32>
    %c0_1 = arith.constant 0 : index
    %c0_2 = arith.constant 0 : index
    %1 = vector.load %arg2[%c0_1, %c0_2] : memref<128x128xf32, #tpu.memory_space<vmem>>, vector<128x128xf32>
    %c0_3 = arith.constant 0 : index
    %c0_4 = arith.constant 0 : index
    %2 = vector.load %arg3[%c0_3, %c0_4] : memref<1x128xf32, #tpu.memory_space<vmem>>, vector<1x128xf32>
    %cst = arith.constant dense<0.000000e+00> : vector<16x128xf32>
    %3 = tpu.matmul %0, %1, %cst {dimension_numbers = #tpu.dot_dimension_numbers<[1], [0], [0], [1], [0, 0, 1, 1], [], []>} : vector<16x128xf32>, vector<128x128xf32>, vector<16x128xf32> -> vector<16x128xf32>
    %4 = vector.broadcast %2 : vector<1x128xf32> to vector<16x128xf32>
    %5 = arith.addf %3, %4 : vector<16x128xf32>
    %c0_5 = arith.constant 0 : index
    %c0_6 = arith.constant 0 : index
    %6 = vector.load %arg4[%c0_5, %c0_6] : memref<16x128xf32, #tpu.memory_space<vmem>>, vector<16x128xf32>
    tpu.vector_store %arg4[%c0_5, %c0_6], %5 {strides = array<i32>} : memref<16x128xf32, #tpu.memory_space<vmem>>, vector<16x128xf32>,
    return
  }
  func.func @transform_0(%arg0: i32) -> (i32, i32) {
    %c0_i32 = arith.constant 0 : i32
    %c0_i32_0 = arith.constant 0 : i32
    return %arg0, %c0_i32 : i32, i32
  }
  func.func @transform_1(%arg0: i32) -> (i32, i32) {
    %c0_i32 = arith.constant 0 : i32
    %c0_i32_0 = arith.constant 0 : i32
    %c0_i32_1 = arith.constant 0 : i32
    return %c0_i32, %c0_i32_0 : i32, i32
  }
  func.func @transform_2(%arg0: i32) -> (i32, i32) {
    %c0_i32 = arith.constant 0 : i32
    %c0_i32_0 = arith.constant 0 : i32
    %c0_i32_1 = arith.constant 0 : i32
    return %c0_i32, %c0_i32_0 : i32, i32
  }
  func.func @transform_3(%arg0: i32) -> (i32, i32) {
    %c0_i32 = arith.constant 0 : i32
    %c0_i32_0 = arith.constant 0 : i32
    return %arg0, %c0_i32 : i32, i32
  }
}

</mosaic_0001>

<bundles_post_ra>
// kernel: _pallas_linear.1
= control target key start
LH: loop header
LB: loop body
LE: loop exit
PB: predicated region body
PF: predicated region fallthrough
CT: control target
= control target key end

     0   :  { %8 = vsyncpa [#allocation3], 0  ;;  %s334_s0 = inlined_call_operand.hbm [shape: f32[16,128], index: 0, kind: input, shape index: {}]   ;;  %s335_s1 = inlined_call_operand.hbm [shape: f32[128,128], index: 1, kind: input, shape index: {}]   ;;  %s336_s2 = inlined_call_operand.vmem [shape: f32[1,128], index: 2, kind: input, shape index: {}]   ;;  %s337_s3 = inlined_call_operand.hbm [shape: f32[16,128], index: 3, kind: output, shape index: {}]  }
   0x1   :  { %9 = vsyncpa [#allocation6], 0 }
   0x2   :  { %10 = vsyncpa [#allocation4], 0  ;;  %s288_s12 = smov [#allocation2]  }
   0x3   :  { %s16_s13 = sshll.u32 %s288_s12, 4  ;;  %s17_s13 = int_to_ptr.vmem [resolvable:$true] %s16_s13 }
   0x4   :  { %s230_s14 = scalar_lea.vmem %s17_s13, 256  ;;  %p235_p1 = scmp.lt.s32.totalorder %s17_s13, %s17_s13 }
   0x5   :  { %p231_p0 = scmp.ne.s32.totalorder %s17_s13, %s230_s14  ;;  %p236_p2 = scmp.lt.s32.totalorder %s230_s14, %s230_s14 }
   0x7   :  { %p237_p3 = por %p236_p2, %p235_p1 }
   0x9   :  { %p238_p4 = pnand %p237_p3, %p231_p0 }
   0xb   :  { %241 = shalt.err (!%p238_p4)
}
   0xc   :  { %s289_s15 = smov 128   ;;  %s290_s16 = smov 8  }
   0xd   :  { %22 = dma.hbm_to_vmem [thread:$0]  %s334_s0, 256, %s17_s13, [#allocation3], %s289_s15, %s289_s15, %s290_s16  }
   0xe   :  { %s291_s19 = smov [#allocation5]  }
   0xf   :  { %s28_s20 = sshll.u32 %s291_s19, 4  ;;  %s29_s20 = int_to_ptr.vmem [resolvable:$true] %s28_s20 }
  0x10   :  { %s250_s21 = scalar_lea.vmem %s29_s20, 2048  ;;  %p255_p6 = scmp.lt.s32.totalorder %s29_s20, %s29_s20 }
  0x11   :  { %p251_p5 = scmp.ne.s32.totalorder %s29_s20, %s250_s21  ;;  %p256_p7 = scmp.lt.s32.totalorder %s250_s21, %s250_s21 }
  0x13   :  { %p257_p8 = por %p256_p7, %p255_p6 }
  0x15   :  { %p258_p9 = pnand %p257_p8, %p251_p5 }
  0x17   :  { %261 = shalt.err (!%p258_p9)
}
  0x18   :  { %34 = dma.hbm_to_vmem [thread:$0]  %s335_s1, 2048, %s29_s20, [#allocation6], %s289_s15, %s289_s15, %s290_s16  }
  0x19   :  { %282 = dma.done.wait [#allocation3], 256  }
  0x1a   :  { %283 = vsyncadd [#allocation3], 4294967040 }
  0x1b   :  { %284 = dma.done.wait [#allocation6], 2048  }
  0x1c   :  { %285 = vsyncadd [#allocation6], 4294965248  ;;  %v60_v0 = vld [vmem:[#allocation5 + $0x78] sm:$0xff]  ;;  %v59_v1 = vld [vmem:[#allocation5 + $0x70] sm:$0xff]  ;;  %s292_s24 = smov [#allocation7]  }
  0x1d   :  { %182 = vmatprep.subr.mxu0 %v60_v0  ;;  %v58_v2 = vld [vmem:[#allocation5 + $0x68] sm:$0xff]  ;;  %v57_v3 = vld [vmem:[#allocation5 + $0x60] sm:$0xff]  ;;  %v43_v4 = vld [vmem:[#allocation2] sm:$0xff]  ;;  %s150_s25 = sshll.u32 %s292_s24, 4  ;;  %s151_s25 = int_to_ptr.vmem [resolvable:$true] %s150_s25 }
  0x1e   :  { %183 = vmatpush3.msra.mxu0 %v60_v0  ;;  %v56_v5 = vld [vmem:[#allocation5 + $0x58] sm:$0xff]  ;;  %214 = vmatprep.mubr.f32.mxu0 %v43_v4  ;;  %v55_v6 = vld [vmem:[#allocation5 + $0x50] sm:$0xff]  ;;  %v54_v7 = vld [vmem:[#allocation5 + $0x48] sm:$0xff]  ;;  %s262_s26 = scalar_lea.vmem %s151_s25, 256  ;;  %p267_p11 = scmp.lt.s32.totalorder %s151_s25, %s151_s25 }
  0x1f   :  { %184 = vmatprep.subr.mxu0 %v59_v1  ;;  %v53_v8 = vld [vmem:[#allocation5 + $0x40] sm:$0xff]  ;;  %v52_v9 = vld [vmem:[#allocation5 + $0x38] sm:$0xff]  ;;  %v51_v10 = vld [vmem:[#allocation5 + $0x30] sm:$0xff]  ;;  %p263_p10 = scmp.ne.s32.totalorder %s151_s25, %s262_s26  ;;  %p268_p12 = scmp.lt.s32.totalorder %s262_s26, %s262_s26 }
  0x20   :  { %185 = vmatpush3.msra.mxu0 %v59_v1  ;;  %v50_v11 = vld [vmem:[#allocation5 + $0x28] sm:$0xff]  ;;  %v49_v12 = vld [vmem:[#allocation5 + $0x20] sm:$0xff]  ;;  %v48_v13 = vld [vmem:[#allocation5 + $0x18] sm:$0xff] }
  0x21   :  { %186 = vmatprep.subr.mxu0 %v58_v2  ;;  %v47_v14 = vld [vmem:[#allocation5 + $0x10] sm:$0xff]  ;;  %v46_v15 = vld [vmem:[#allocation5 + $0x8] sm:$0xff]  ;;  %v45_v16 = vld [vmem:[#allocation5] sm:$0xff]  ;;  %p269_p13 = por %p268_p12, %p267_p11 }
  0x22   :  { %187 = vmatpush3.msra.mxu0 %v58_v2  ;;  %v44_v17 = vld [vmem:[#allocation2 + $0x8] sm:$0xff]  ;;  %v163_v18 = vld [vmem:[%s336_s2] ss:$0 sm:$0xff] }
  0x23   :  { %188 = vmatprep.subr.mxu0 %v57_v3  ;;  %p270_p0 = pnand %p269_p13, %p263_p10 }
  0x24   :  { %189 = vmatpush3.msra.mxu0 %v57_v3 }
  0x25   :  { %190 = vmatprep.subr.mxu0 %v56_v5 }
  0x26   :  { %191 = vmatpush3.msra.mxu0 %v56_v5 }
  0x27   :  { %192 = vmatprep.subr.mxu0 %v55_v6 }
  0x28   :  { %193 = vmatpush3.msra.mxu0 %v55_v6 }
  0x29   :  { %194 = vmatprep.subr.mxu0 %v54_v7 }
  0x2a   :  { %195 = vmatpush3.msra.mxu0 %v54_v7 }
  0x2b   :  { %196 = vmatprep.subr.mxu0 %v53_v8 }
  0x2c   :  { %197 = vmatpush3.msra.mxu0 %v53_v8 }
  0x2d   :  { %198 = vmatprep.subr.mxu0 %v52_v9 }
  0x2e   :  { %199 = vmatpush3.msra.mxu0 %v52_v9 }
  0x2f   :  { %200 = vmatprep.subr.mxu0 %v51_v10 }
  0x30   :  { %201 = vmatpush3.msra.mxu0 %v51_v10 }
  0x31   :  { %202 = vmatprep.subr.mxu0 %v50_v11 }
  0x32   :  { %203 = vmatpush3.msra.mxu0 %v50_v11 }
  0x33   :  { %204 = vmatprep.subr.mxu0 %v49_v12 }
  0x34   :  { %205 = vmatpush3.msra.mxu0 %v49_v12 }
  0x35   :  { %206 = vmatprep.subr.mxu0 %v48_v13 }
  0x36   :  { %207 = vmatpush3.msra.mxu0 %v48_v13 }
  0x37   :  { %208 = vmatprep.subr.mxu0 %v47_v14 }
  0x38   :  { %209 = vmatpush3.msra.mxu0 %v47_v14 }
  0x39   :  { %210 = vmatprep.subr.mxu0 %v46_v15 }
  0x3a   :  { %211 = vmatpush3.msra.mxu0 %v46_v15 }
  0x3b   :  { %212 = vmatprep.subr.mxu0 %v45_v16 }
  0x3c   :  { %213 = vmatpush3.msra.mxu0 %v45_v16 }
  0x3d   :  { %215 = vmatmul.mubr.f32.vlgmr.msra.gmra.mxu0 %v44_v17 }
  0xfd   :  { %v216_v19 = vpop.f32.mrf.mxu0 }
  0xfe   :  { %v140_v20 = vadd.f32 %v216_v19, %v163_v18 }
  0xff   :  { %v134_v21 = vpop.f32.mrf.mxu0 }
 0x100   :  { %144 = vst [vmem:[#allocation7 + $0x8] sm:$0xff] %v140_v20  ;;  %v135_v22 = vadd.f32 %v163_v18, %v134_v21 }
 0x102   :  { %143 = vst [vmem:[#allocation7] sm:$0xff] %v135_v22 }
 0x103   :  { %273 = shalt.err (!%p270_p0)
}
 0x104   :  { %156 = dma.vmem_to_hbm [thread:$0]  %s151_s25, 256, %s337_s3, [#allocation4], %s289_s15, %s289_s15, %s290_s16  }
 0x105   :  { %286 = dma.done.wait [#allocation4], 256  }
 0x106   :  { %287 = vsyncadd [#allocation4], 4294967040 }
 0x107   :  { %160 = vsyncpa [#allocation3], 1 }
 0x108   :  { %161 = vsyncpa [#allocation6], 1 }
 0x109   :  { %162 = vsyncpa [#allocation4], 1 }

</bundles_post_ra>
